<compile_context>
chip_gen: v5e
topology: v5e:2x2
jax: 0.10.0
libtpu: 0.0.40
codegen_flags: <defaults>
</compile_context>

<pallas_src>
import functools

import jax
import jax.numpy as jnp
from jax.experimental import pallas as pl
from jax.experimental.pallas import tpu as pltpu

LANES = 128  # TPU lane width


def _round_up(x, m):
    return (x + m - 1) // m * m


def ddqn_kernel(x_ref, wc_ref, bc_ref, wb_ref, bb_ref, wh_ref, bh_ref,
                out_ref, *, action_size, compute_dtype):
    """Fused DDQN forward for one batch tile (3 matmuls total)."""
    x = x_ref[...]                                                    # (TB, S) f32

    # common = relu(x @ Wc + bc)                                      (TB, C)
    common = jnp.dot(x.astype(compute_dtype), wc_ref[...],
                     preferred_element_type=jnp.float32)
    common = jnp.maximum(common + bc_ref[...], 0.0)

    # fused value/advantage hidden layer: relu(common @ [Wv|Wa] + b)  (TB, V+ADV)
    branch = jnp.dot(common.astype(compute_dtype), wb_ref[...],
                     preferred_element_type=jnp.float32)
    branch = jnp.maximum(branch + bb_ref[...], 0.0)

    # fused heads: [adv_pad (128 lanes) | value replicated (128 lanes)]
    head = jnp.dot(branch.astype(compute_dtype), wh_ref[...],
                   preferred_element_type=jnp.float32) + bh_ref[...]  # (TB, 256)

    adv = head[:, :LANES]          # lanes >= action_size are exactly zero
    val = head[:, LANES:]          # value broadcast across all 128 lanes
    # mean over the REAL action columns only (padding columns are exact zeros)
    adv_mean = jnp.sum(adv, axis=1, keepdims=True) * (1.0 / action_size)

    out_ref[...] = val + adv - adv_mean                               # (TB, 128) f32


def _fuse_params(params, compute_dtype):
    """Fuse branch weights, build block-structured head weight, fold biases."""
    wc, bc, wvi, bvi, wvo, bvo, wai, bai, wao, bao = params
    V = wvi.shape[1]
    ADV = wai.shape[1]
    A = wao.shape[1]
    assert A <= LANES, "action_size must be <= 128 for the padded head layout"

    # fused branch: (C, V+ADV), (1, V+ADV)
    wb = jnp.concatenate([wvi, wai], axis=1)
    bb = jnp.concatenate([bvi, bai], axis=1)

    # block head: rows [0, V) -> value columns, rows [V, V+ADV) -> adv columns
    wh = jnp.zeros((V + ADV, 2 * LANES), jnp.float32)
    wh = wh.at[V:, :A].set(wao)                                        # advantage
    wh = wh.at[:V, LANES:].set(jnp.broadcast_to(wvo, (V, LANES)))      # value (replicated)
    bh = jnp.zeros((1, 2 * LANES), jnp.float32)
    bh = bh.at[0, :A].set(bao[0])
    bh = bh.at[0, LANES:].set(bvo[0, 0])                               # bvo folded in

    return (wc.astype(compute_dtype), bc.astype(jnp.float32),
            wb.astype(compute_dtype), bb.astype(jnp.float32),
            wh.astype(compute_dtype), bh.astype(jnp.float32), A)


@functools.partial(jax.jit, static_argnames=("block_b", "compute_dtype"))
def ddqn_forward(x, params, *, block_b=512, compute_dtype=jnp.bfloat16):
    wc, bc, wb, bb, wh, bh, action_size = _fuse_params(params, compute_dtype)

    B, S = x.shape
    C = wc.shape[1]
    C2 = wb.shape[1]
    H = wh.shape[1]                      # 2 * LANES

    # batch tile: full MXU rows when batch is large, sublane-aligned when tiny
    tb = min(block_b, _round_up(max(B, 1), 8))
    b_pad = _round_up(B, tb)
    if b_pad != B:
        x = jnp.pad(x, ((0, b_pad - B), (0, 0)))

    const = lambda i: (0, 0)             # weights resident across batch tiles

    out = pl.pallas_call(
        functools.partial(ddqn_kernel,
                          action_size=action_size,
                          compute_dtype=compute_dtype),
        out_shape=jax.ShapeDtypeStruct((b_pad, LANES), jnp.float32),
        grid=(b_pad // tb,),
        in_specs=[
            pl.BlockSpec((tb, S), lambda i: (i, 0)),   # x: streamed over batch
            pl.BlockSpec((S, C), const),               # Wc
            pl.BlockSpec((1, C), const),               # bc
            pl.BlockSpec((C, C2), const),              # fused branch weight
            pl.BlockSpec((1, C2), const),              # fused branch bias
            pl.BlockSpec((C2, H), const),              # fused head weight
            pl.BlockSpec((1, H), const),               # fused head bias
        ],
        out_specs=pl.BlockSpec((tb, LANES), lambda i: (i, 0)),
        compiler_params=pltpu.CompilerParams(
            dimension_semantics=("parallel",)),        # 2 TCs on v7x
    )(x, wc, bc, wb, bb, wh, bh)

    return out[:B, :action_size]


def init_params(key, state_size, action_size,
                common_size=256, value_size=128, advantage_size=128):
    """Deterministic synthetic init (uniform, PyTorch Linear fan-in bound)."""
    def linear(k, fan_in, fan_out):
        k1, k2 = jax.random.split(k)
        bound = 1.0 / jnp.sqrt(fan_in)
        w = jax.random.uniform(k1, (fan_in, fan_out), jnp.float32, -bound, bound)
        b = jax.random.uniform(k2, (1, fan_out), jnp.float32, -bound, bound)
        return w, b

    keys = jax.random.split(key, 5)
    wc, bc = linear(keys[0], state_size, common_size)
    wvi, bvi = linear(keys[1], common_size, value_size)
    wvo, bvo = linear(keys[2], value_size, 1)
    wai, bai = linear(keys[3], common_size, advantage_size)
    wao, bao = linear(keys[4], advantage_size, action_size)
    return (wc, bc, wvi, bvi, wvo, bvo, wai, bai, wao, bao)


def ddqn_reference(x, params):
    (wc, bc, wvi, bvi, wvo, bvo, wai, bai, wao, bao) = params
    common = jnp.maximum(x @ wc + bc, 0.0)
    value = jnp.maximum(common @ wvi + bvi, 0.0)
    adv = jnp.maximum(common @ wai + bai, 0.0)
    value = value @ wvo + bvo
    adv = adv @ wao + bao
    return value + adv - jnp.mean(adv, axis=1, keepdims=True)


if __name__ == "__main__":
    state_size = 16
    action_size = 4
    batch = 2

    key = jax.random.PRNGKey(0)
    k_params, k_x, k_x2 = jax.random.split(key, 3)
    params = init_params(k_params, state_size, action_size)

    # small batch (matches the module's typical per-step inference)
    x = jax.random.normal(k_x, (batch, state_size), jnp.float32)
    out = jax.block_until_ready(ddqn_forward(x, params))
    ref = ddqn_reference(x, params)
    assert out.shape == (batch, action_size)
    # bf16 matmul operands -> compare to the f32 reference at bf16 tolerance
    assert jnp.allclose(out, ref, atol=5e-2, rtol=5e-2), \
        float(jnp.max(jnp.abs(out - ref)))

    # larger, non-multiple batch exercising the batch-tiled grid (3 tiles)
    x_big = jax.random.normal(k_x2, (1027, state_size), jnp.float32)
    out_big = jax.block_until_ready(ddqn_forward(x_big, params))
    ref_big = ddqn_reference(x_big, params)
    assert out_big.shape == (1027, action_size)
    assert jnp.allclose(out_big, ref_big, atol=5e-2, rtol=5e-2), \
        float(jnp.max(jnp.abs(out_big - ref_big)))

    print("KERNEL_OK")
</pallas_src>

<mosaic_0001>
module attributes {stable_mosaic.version = 11 : i64} {
  func.func @ddqn_kernel(%arg0: i32, %arg1: memref<8x16xf32, #tpu.memory_space<vmem>>, %arg2: memref<16x256xbf16, #tpu.memory_space<vmem>>, %arg3: memref<1x256xf32, #tpu.memory_space<vmem>>, %arg4: memref<256x256xbf16, #tpu.memory_space<vmem>>, %arg5: memref<1x256xf32, #tpu.memory_space<vmem>>, %arg6: memref<256x256xbf16, #tpu.memory_space<vmem>>, %arg7: memref<1x256xf32, #tpu.memory_space<vmem>>, %arg8: memref<8x128xf32, #tpu.memory_space<vmem>>) attributes {dimension_semantics = [#tpu.dimension_semantics<parallel>], iteration_bounds = array<i64: 1>, scalar_prefetch = 0 : i64, scratch_operands = 0 : i64, tpu.core_type = #tpu.core_type<tc>, window_params = [{transform_indices = @transform_0, window_bounds = array<i64: 8, 16>}, {pipeline_mode = #tpu.pipeline_mode<synchronous>, transform_indices = @transform_1, window_bounds = array<i64: 16, 256>}, {pipeline_mode = #tpu.pipeline_mode<synchronous>, transform_indices = @transform_2, window_bounds = array<i64: 1, 256>}, {pipeline_mode = #tpu.pipeline_mode<synchronous>, transform_indices = @transform_3, window_bounds = array<i64: 256, 256>}, {pipeline_mode = #tpu.pipeline_mode<synchronous>, transform_indices = @transform_4, window_bounds = array<i64: 1, 256>}, {pipeline_mode = #tpu.pipeline_mode<synchronous>, transform_indices = @transform_5, window_bounds = array<i64: 256, 256>}, {pipeline_mode = #tpu.pipeline_mode<synchronous>, transform_indices = @transform_6, window_bounds = array<i64: 1, 256>}, {transform_indices = @transform_7, window_bounds = array<i64: 8, 128>}]} {
    %c0 = arith.constant 0 : index
    %c0_0 = arith.constant 0 : index
    %0 = vector.load %arg1[%c0, %c0_0] : memref<8x16xf32, #tpu.memory_space<vmem>>, vector<8x16xf32>
    %1 = arith.truncf %0 : vector<8x16xf32> to vector<8x16xbf16>
    %c0_1 = arith.constant 0 : index
    %c0_2 = arith.constant 0 : index
    %2 = vector.load %arg2[%c0_1, %c0_2] : memref<16x256xbf16, #tpu.memory_space<vmem>>, vector<16x256xbf16>
    %cst = arith.constant dense<0.000000e+00> : vector<8x256xf32>
    %3 = tpu.matmul %1, %2, %cst {dimension_numbers = #tpu.dot_dimension_numbers<[1], [0], [0], [1], [0, 0, 1, 1], [], []>} : vector<8x16xbf16>, vector<16x256xbf16>, vector<8x256xf32> -> vector<8x256xf32>
    %c0_3 = arith.constant 0 : index
    %c0_4 = arith.constant 0 : index
    %4 = vector.load %arg3[%c0_3, %c0_4] : memref<1x256xf32, #tpu.memory_space<vmem>>, vector<1x256xf32>
    %5 = vector.broadcast %4 : vector<1x256xf32> to vector<8x256xf32>
    %6 = arith.addf %3, %5 : vector<8x256xf32>
    %cst_5 = arith.constant 0.000000e+00 : f32
    %7 = vector.broadcast %cst_5 : f32 to vector<8x256xf32>
    %8 = arith.maximumf %6, %7 : vector<8x256xf32>
    %9 = arith.truncf %8 : vector<8x256xf32> to vector<8x256xbf16>
    %c0_6 = arith.constant 0 : index
    %c0_7 = arith.constant 0 : index
    %10 = vector.load %arg4[%c0_6, %c0_7] : memref<256x256xbf16, #tpu.memory_space<vmem>>, vector<256x256xbf16>
    %cst_8 = arith.constant dense<0.000000e+00> : vector<8x256xf32>
    %11 = tpu.matmul %9, %10, %cst_8 {dimension_numbers = #tpu.dot_dimension_numbers<[1], [0], [0], [1], [0, 0, 1, 1], [], []>} : vector<8x256xbf16>, vector<256x256xbf16>, vector<8x256xf32> -> vector<8x256xf32>
    %c0_9 = arith.constant 0 : index
    %c0_10 = arith.constant 0 : index
    %12 = vector.load %arg5[%c0_9, %c0_10] : memref<1x256xf32, #tpu.memory_space<vmem>>, vector<1x256xf32>
    %13 = vector.broadcast %12 : vector<1x256xf32> to vector<8x256xf32>
    %14 = arith.addf %11, %13 : vector<8x256xf32>
    %cst_11 = arith.constant 0.000000e+00 : f32
    %15 = vector.broadcast %cst_11 : f32 to vector<8x256xf32>
    %16 = arith.maximumf %14, %15 : vector<8x256xf32>
    %17 = arith.truncf %16 : vector<8x256xf32> to vector<8x256xbf16>
    %c0_12 = arith.constant 0 : index
    %c0_13 = arith.constant 0 : index
    %18 = vector.load %arg6[%c0_12, %c0_13] : memref<256x256xbf16, #tpu.memory_space<vmem>>, vector<256x256xbf16>
    %cst_14 = arith.constant dense<0.000000e+00> : vector<8x256xf32>
    %19 = tpu.matmul %17, %18, %cst_14 {dimension_numbers = #tpu.dot_dimension_numbers<[1], [0], [0], [1], [0, 0, 1, 1], [], []>} : vector<8x256xbf16>, vector<256x256xbf16>, vector<8x256xf32> -> vector<8x256xf32>
    %c0_15 = arith.constant 0 : index
    %c0_16 = arith.constant 0 : index
    %20 = vector.load %arg7[%c0_15, %c0_16] : memref<1x256xf32, #tpu.memory_space<vmem>>, vector<1x256xf32>
    %21 = vector.broadcast %20 : vector<1x256xf32> to vector<8x256xf32>
    %22 = arith.addf %19, %21 : vector<8x256xf32>
    %23 = vector.extract_strided_slice %22 {offsets = [0, 0], sizes = [8, 128], strides = [1, 1]} : vector<8x256xf32> to vector<8x128xf32>
    %24 = vector.extract_strided_slice %22 {offsets = [0, 128], sizes = [8, 128], strides = [1, 1]} : vector<8x256xf32> to vector<8x128xf32>
    %cst_17 = arith.constant dense<0.000000e+00> : vector<8xf32>
    %25 = vector.multi_reduction <add>, %23, %cst_17 [1] : vector<8x128xf32> to vector<8xf32>
    %26 = vector.shape_cast %25 : vector<8xf32> to vector<8x1xf32>
    %cst_18 = arith.constant 2.500000e-01 : f32
    %27 = vector.broadcast %cst_18 : f32 to vector<8x1xf32>
    %28 = arith.mulf %26, %27 : vector<8x1xf32>
    %29 = arith.addf %24, %23 : vector<8x128xf32>
    %30 = vector.broadcast %28 : vector<8x1xf32> to vector<8x128xf32>
    %31 = arith.subf %29, %30 : vector<8x128xf32>
    %c0_19 = arith.constant 0 : index
    %c0_20 = arith.constant 0 : index
    %32 = vector.load %arg8[%c0_19, %c0_20] : memref<8x128xf32, #tpu.memory_space<vmem>>, vector<8x128xf32>
    tpu.vector_store %arg8[%c0_19, %c0_20], %31 {strides = array<i32>} : memref<8x128xf32, #tpu.memory_space<vmem>>, vector<8x128xf32>,
    return
  }
  func.func @transform_0(%arg0: i32) -> (i32, i32) {
    %c0_i32 = arith.constant 0 : i32
    %c0_i32_0 = arith.constant 0 : i32
    return %arg0, %c0_i32 : i32, i32
  }
  func.func @transform_1(%arg0: i32) -> (i32, i32) {
    %c0_i32 = arith.constant 0 : i32
    %c0_i32_0 = arith.constant 0 : i32
    %c0_i32_1 = arith.constant 0 : i32
    return %c0_i32, %c0_i32_0 : i32, i32
  }
  func.func @transform_2(%arg0: i32) -> (i32, i32) {
    %c0_i32 = arith.constant 0 : i32
    %c0_i32_0 = arith.constant 0 : i32
    %c0_i32_1 = arith.constant 0 : i32
    return %c0_i32, %c0_i32_0 : i32, i32
  }
  func.func @transform_3(%arg0: i32) -> (i32, i32) {
    %c0_i32 = arith.constant 0 : i32
    %c0_i32_0 = arith.constant 0 : i32
    %c0_i32_1 = arith.constant 0 : i32
    return %c0_i32, %c0_i32_0 : i32, i32
  }
  func.func @transform_4(%arg0: i32) -> (i32, i32) {
    %c0_i32 = arith.constant 0 : i32
    %c0_i32_0 = arith.constant 0 : i32
    %c0_i32_1 = arith.constant 0 : i32
    return %c0_i32, %c0_i32_0 : i32, i32
  }
  func.func @transform_5(%arg0: i32) -> (i32, i32) {
    %c0_i32 = arith.constant 0 : i32
    %c0_i32_0 = arith.constant 0 : i32
    %c0_i32_1 = arith.constant 0 : i32
    return %c0_i32, %c0_i32_0 : i32, i32
  }
  func.func @transform_6(%arg0: i32) -> (i32, i32) {
    %c0_i32 = arith.constant 0 : i32
    %c0_i32_0 = arith.constant 0 : i32
    %c0_i32_1 = arith.constant 0 : i32
    return %c0_i32, %c0_i32_0 : i32, i32
  }
  func.func @transform_7(%arg0: i32) -> (i32, i32) {
    %c0_i32 = arith.constant 0 : i32
    %c0_i32_0 = arith.constant 0 : i32
    return %arg0, %c0_i32 : i32, i32
  }
}

</mosaic_0001>

<bundles_post_ra>
// kernel: ddqn_forward.1
= control target key start
LH: loop header
LB: loop body
LE: loop exit
PB: predicated region body
PF: predicated region fallthrough
CT: control target
= control target key end

     0   :  { %vm47_vm0 = vcmask 130048   ;;  %s1380_s1 = inlined_call_operand.vmem [shape: bf16[16,256], index: 1, kind: input, shape index: {}]   ;;  %s1381_s0 = inlined_call_operand.vmem [shape: f32[8,16], index: 0, kind: input, shape index: {}]   ;;  %s1382_s3 = inlined_call_operand.vmem [shape: bf16[256,256], index: 3, kind: input, shape index: {}]   ;;  %s1383_s5 = inlined_call_operand.vmem [shape: bf16[256,256], index: 5, kind: input, shape index: {}]   ;;  %s1384_s2 = inlined_call_operand.vmem [shape: f32[1,256], index: 2, kind: input, shape index: {}]   ;;  %s1385_s4 = inlined_call_operand.vmem [shape: f32[1,256], index: 4, kind: input, shape index: {}]   ;;  %s1386_s6 = inlined_call_operand.vmem [shape: f32[1,256], index: 6, kind: input, shape index: {}]   ;;  %s1387_s7 = inlined_call_operand.vmem [shape: f32[8,128], index: 7, kind: output, shape index: {}]  }
   0x1   :  { %v597_v0 = vld [vmem:[%s1380_s1] sm:$0xf]  ;;  %v862_v1 = vld [vmem:[%s1380_s1 + $0x4] sm:$0xf0]  ;;  %v861_v2 = vld [vmem:[%s1380_s1 + $0x4] sm:$0xf] }
   0x2   :  { %v598_v3 = vor.u32 %v862_v1, %v597_v0  ;;  %v599_v4 = vld [vmem:[%s1380_s1 + $0x8] sm:$0xf0]  ;;  %v27_v5 = vld [vmem:[%s1381_s0] sm:$0xff]  ;;  %v663_v6 = vld [vmem:[%s1382_s3 + $0x70] sm:$0xf] }
   0x3   :  { %v602_v7 = vor.u32 %v861_v2, %v599_v4  ;;  %v28_v8 = vpack.c.bf16 %v27_v5, %v27_v5  ;;  %v878_v9 = vld [vmem:[%s1382_s3 + $0x74] sm:$0xf0]  ;;  %v727_v10 = vld [vmem:[%s1382_s3 + $0xf0] sm:$0xf]  ;;  %v877_v14 = vld [vmem:[%s1382_s3 + $0x74] sm:$0xf] }
   0x4   :  { %v894_v11 = vld [vmem:[%s1382_s3 + $0xf4] sm:$0xf0]  ;;  %58 = vmatpush.bf16.msra.mxu0 %v598_v3  ;;  %v664_v12 = vor.u32 %v878_v9, %v663_v6  ;;  %v665_v15 = vld [vmem:[%s1382_s3 + $0x78] sm:$0xf0]  ;;  %v893_v16 = vld [vmem:[%s1382_s3 + $0xf4] sm:$0xf] }
   0x5   :  { %v728_v13 = vor.u32 %v894_v11, %v727_v10  ;;  %71 = vmatpush.bf16.msra.mxu1 %v602_v7  ;;  %v668_v17 = vor.u32 %v877_v14, %v665_v15  ;;  %v729_v18 = vld [vmem:[%s1382_s3 + $0xf8] sm:$0xf0]  ;;  %v655_v19 = vld [vmem:[%s1382_s3 + $0x60] sm:$0xf]  ;;  %v876_v20 = vld [vmem:[%s1382_s3 + $0x64] sm:$0xf0] }
   0x6   :  { %279 = vmatpush.bf16.msra.mxu2 %v664_v12  ;;  %v732_v21 = vor.u32 %v893_v16, %v729_v18  ;;  %v656_v22 = vor.u32 %v876_v20, %v655_v19  ;;  %v719_v23 = vld [vmem:[%s1382_s3 + $0xe0] sm:$0xf]  ;;  %v892_v24 = vld [vmem:[%s1382_s3 + $0xe4] sm:$0xf0]  ;;  %v875_v25 = vld [vmem:[%s1382_s3 + $0x64] sm:$0xf] }
   0x7   :  { %292 = vmatpush.bf16.msra.mxu3 %v728_v13  ;;  %603 = vmatmul.msk.bf16.vlgmr.msra.gmra.mxu0 %vm47_vm0, %v28_v8  ;;  %v720_v26 = vor.u32 %v892_v24, %v719_v23  ;;  %v657_v27 = vld [vmem:[%s1382_s3 + $0x68] sm:$0xf0]  ;;  %v891_v28 = vld [vmem:[%s1382_s3 + $0xe4] sm:$0xf]  ;;  %v647_v31 = vld [vmem:[%s1382_s3 + $0x50] sm:$0xf] }
   0x8   :  { %v721_v29 = vld [vmem:[%s1382_s3 + $0xe8] sm:$0xf0]  ;;  %604 = vmatmul.msk.bf16.vlgmr.msra.gmra.mxu1 %vm47_vm0, %v28_v8  ;;  %305 = vmatpush.bf16.msrb.mxu0 %v668_v17  ;;  %v660_v30 = vor.u32 %v875_v25, %v657_v27  ;;  %v874_v32 = vld [vmem:[%s1382_s3 + $0x54] sm:$0xf0]  ;;  %v711_v33 = vld [vmem:[%s1382_s3 + $0xd0] sm:$0xf] }
   0x9   :  { %318 = vmatpush.bf16.msrb.mxu1 %v732_v21  ;;  %v724_v34 = vor.u32 %v891_v28, %v721_v29  ;;  %v890_v35 = vld [vmem:[%s1382_s3 + $0xd4] sm:$0xf0]  ;;  %v873_v36 = vld [vmem:[%s1382_s3 + $0x54] sm:$0xf]  ;;  %v649_v37 = vld [vmem:[%s1382_s3 + $0x58] sm:$0xf0]  ;;  %v648_v38 = vor.u32 %v874_v32, %v647_v31 }
   0xa   :  { %280 = vmatpush.bf16.msra.mxu2 %v656_v22  ;;  %v712_v39 = vor.u32 %v890_v35, %v711_v33  ;;  %v889_v40 = vld [vmem:[%s1382_s3 + $0xd4] sm:$0xf]  ;;  %v713_v41 = vld [vmem:[%s1382_s3 + $0xd8] sm:$0xf0]  ;;  %v639_v42 = vld [vmem:[%s1382_s3 + $0x40] sm:$0xf]  ;;  %v652_v46 = vor.u32 %v873_v36, %v649_v37 }
   0xb   :  { %293 = vmatpush.bf16.msra.mxu3 %v720_v26  ;;  %v872_v43 = vld [vmem:[%s1382_s3 + $0x44] sm:$0xf0]  ;;  %v703_v44 = vld [vmem:[%s1382_s3 + $0xc0] sm:$0xf]  ;;  %v716_v47 = vor.u32 %v889_v40, %v713_v41  ;;  %v871_v48 = vld [vmem:[%s1382_s3 + $0x44] sm:$0xf] }
   0xc   :  { %v888_v45 = vld [vmem:[%s1382_s3 + $0xc4] sm:$0xf0]  ;;  %306 = vmatpush.bf16.msrb.mxu0 %v660_v30  ;;  %v641_v49 = vld [vmem:[%s1382_s3 + $0x48] sm:$0xf0]  ;;  %v640_v50 = vor.u32 %v872_v43, %v639_v42  ;;  %v887_v52 = vld [vmem:[%s1382_s3 + $0xc4] sm:$0xf] }
   0xd   :  { %319 = vmatpush.bf16.msrb.mxu1 %v724_v34  ;;  %v704_v51 = vor.u32 %v888_v45, %v703_v44  ;;  %v705_v53 = vld [vmem:[%s1382_s3 + $0xc8] sm:$0xf0]  ;;  %v631_v54 = vld [vmem:[%s1382_s3 + $0x30] sm:$0xf]  ;;  %v870_v55 = vld [vmem:[%s1382_s3 + $0x34] sm:$0xf0]  ;;  %v644_v58 = vor.u32 %v871_v48, %v641_v49 }
   0xe   :  { %281 = vmatpush.bf16.msra.mxu2 %v648_v38  ;;  %v695_v56 = vld [vmem:[%s1382_s3 + $0xb0] sm:$0xf]  ;;  %v886_v57 = vld [vmem:[%s1382_s3 + $0xb4] sm:$0xf0]  ;;  %v708_v59 = vor.u32 %v887_v52, %v705_v53  ;;  %v869_v60 = vld [vmem:[%s1382_s3 + $0x34] sm:$0xf]  ;;  %v632_v62 = vor.u32 %v870_v55, %v631_v54 }
   0xf   :  { %294 = vmatpush.bf16.msra.mxu3 %v712_v39  ;;  %v633_v61 = vld [vmem:[%s1382_s3 + $0x38] sm:$0xf0]  ;;  %v696_v63 = vor.u32 %v886_v57, %v695_v56  ;;  %v885_v0 = vld [vmem:[%s1382_s3 + $0xb4] sm:$0xf]  ;;  %v623_v2 = vld [vmem:[%s1382_s3 + $0x20] sm:$0xf] }
  0x10   :  { %307 = vmatpush.bf16.msrb.mxu0 %v652_v46  ;;  %v697_v1 = vld [vmem:[%s1382_s3 + $0xb8] sm:$0xf0]  ;;  %v868_v3 = vld [vmem:[%s1382_s3 + $0x24] sm:$0xf0]  ;;  %v687_v4 = vld [vmem:[%s1382_s3 + $0xa0] sm:$0xf]  ;;  %v636_v6 = vor.u32 %v869_v60, %v633_v61 }
  0x11   :  { %320 = vmatpush.bf16.msrb.mxu1 %v716_v47  ;;  %v884_v5 = vld [vmem:[%s1382_s3 + $0xa4] sm:$0xf0]  ;;  %v700_v7 = vor.u32 %v885_v0, %v697_v1  ;;  %v867_v8 = vld [vmem:[%s1382_s3 + $0x24] sm:$0xf]  ;;  %v625_v9 = vld [vmem:[%s1382_s3 + $0x28] sm:$0xf0]  ;;  %v624_v10 = vor.u32 %v868_v3, %v623_v2 }
  0x12   :  { %282 = vmatpush.bf16.msra.mxu2 %v640_v50  ;;  %v688_v11 = vor.u32 %v884_v5, %v687_v4  ;;  %v883_v12 = vld [vmem:[%s1382_s3 + $0xa4] sm:$0xf]  ;;  %v689_v13 = vld [vmem:[%s1382_s3 + $0xa8] sm:$0xf0]  ;;  %v628_v14 = vor.u32 %v867_v8, %v625_v9  ;;  %v615_v16 = vld [vmem:[%s1382_s3 + $0x10] sm:$0xf] }
  0x13   :  { %295 = vmatpush.bf16.msra.mxu3 %v704_v51  ;;  %v692_v15 = vor.u32 %v883_v12, %v689_v13  ;;  %v866_v17 = vld [vmem:[%s1382_s3 + $0x14] sm:$0xf0]  ;;  %v679_v18 = vld [vmem:[%s1382_s3 + $0x90] sm:$0xf]  ;;  %v865_v21 = vld [vmem:[%s1382_s3 + $0x14] sm:$0xf] }
  0x14   :  { %308 = vmatpush.bf16.msrb.mxu0 %v644_v58  ;;  %v616_v19 = vor.u32 %v866_v17, %v615_v16  ;;  %v882_v20 = vld [vmem:[%s1382_s3 + $0x94] sm:$0xf0]  ;;  %v617_v22 = vld [vmem:[%s1382_s3 + $0x18] sm:$0xf0]  ;;  %v881_v25 = vld [vmem:[%s1382_s3 + $0x94] sm:$0xf] }
  0x15   :  { %321 = vmatpush.bf16.msrb.mxu1 %v708_v59  ;;  %v680_v23 = vor.u32 %v882_v20, %v679_v18  ;;  %v620_v24 = vor.u32 %v865_v21, %v617_v22  ;;  %v681_v26 = vld [vmem:[%s1382_s3 + $0x98] sm:$0xf0]  ;;  %v607_v28 = vld [vmem:[%s1382_s3] sm:$0xf]  ;;  %v864_v29 = vld [vmem:[%s1382_s3 + $0x4] sm:$0xf0] }
  0x16   :  { %283 = vmatpush.bf16.msra.mxu2 %v632_v62  ;;  %v684_v27 = vor.u32 %v881_v25, %v681_v26  ;;  %v671_v30 = vld [vmem:[%s1382_s3 + $0x80] sm:$0xf]  ;;  %v608_v31 = vor.u32 %v864_v29, %v607_v28  ;;  %v880_v32 = vld [vmem:[%s1382_s3 + $0x84] sm:$0xf0]  ;;  %v863_v33 = vld [vmem:[%s1382_s3 + $0x4] sm:$0xf] }
  0x17   :  { %296 = vmatpush.bf16.msra.mxu3 %v696_v63  ;;  %v609_v34 = vld [vmem:[%s1382_s3 + $0x8] sm:$0xf0]  ;;  %v672_v35 = vor.u32 %v880_v32, %v671_v30  ;;  %v879_v37 = vld [vmem:[%s1382_s3 + $0x84] sm:$0xf]  ;;  %v855_v40 = vld [vmem:[%s1383_s5 + $0xf0] sm:$0xf] }
  0x18   :  { %309 = vmatpush.bf16.msrb.mxu0 %v636_v6  ;;  %v612_v36 = vor.u32 %v863_v33, %v609_v34  ;;  %v673_v38 = vld [vmem:[%s1382_s3 + $0x88] sm:$0xf0]  ;;  %v926_v41 = vld [vmem:[%s1383_s5 + $0xf4] sm:$0xf0]  ;;  %v925_v42 = vld [vmem:[%s1383_s5 + $0xf4] sm:$0xf] }
  0x19   :  { %322 = vmatpush.bf16.msrb.mxu1 %v700_v7  ;;  %v676_v39 = vor.u32 %v879_v37, %v673_v38  ;;  %v856_v43 = vor.u32 %v926_v41, %v855_v40  ;;  %v857_v44 = vld [vmem:[%s1383_s5 + $0xf8] sm:$0xf0]  ;;  %v847_v45 = vld [vmem:[%s1383_s5 + $0xe0] sm:$0xf]  ;;  %v924_v46 = vld [vmem:[%s1383_s5 + $0xe4] sm:$0xf0] }
  0x1a   :  { %284 = vmatpush.bf16.msra.mxu2 %v624_v10  ;;  %v860_v47 = vor.u32 %v925_v42, %v857_v44  ;;  %v923_v48 = vld [vmem:[%s1383_s5 + $0xe4] sm:$0xf]  ;;  %v849_v49 = vld [vmem:[%s1383_s5 + $0xe8] sm:$0xf0]  ;;  %v791_v50 = vld [vmem:[%s1383_s5 + $0x70] sm:$0xf]  ;;  %v848_v51 = vor.u32 %v924_v46, %v847_v45 }
  0x1b   :  { %297 = vmatpush.bf16.msra.mxu3 %v688_v11  ;;  %v910_v52 = vld [vmem:[%s1383_s5 + $0x74] sm:$0xf0]  ;;  %v909_v53 = vld [vmem:[%s1383_s5 + $0x74] sm:$0xf]  ;;  %v793_v54 = vld [vmem:[%s1383_s5 + $0x78] sm:$0xf0]  ;;  %v852_v55 = vor.u32 %v923_v48, %v849_v49 }
  0x1c   :  { %310 = vmatpush.bf16.msrb.mxu0 %v628_v14  ;;  %v792_v56 = vor.u32 %v910_v52, %v791_v50  ;;  %v796_v57 = vor.u32 %v909_v53, %v793_v54  ;;  %v839_v58 = vld [vmem:[%s1383_s5 + $0xd0] sm:$0xf]  ;;  %v922_v59 = vld [vmem:[%s1383_s5 + $0xd4] sm:$0xf0]  ;;  %v921_v60 = vld [vmem:[%s1383_s5 + $0xd4] sm:$0xf] }
  0x1d   :  { %323 = vmatpush.bf16.msrb.mxu1 %v692_v15  ;;  %v841_v61 = vld [vmem:[%s1383_s5 + $0xd8] sm:$0xf0]  ;;  %v783_v62 = vld [vmem:[%s1383_s5 + $0x60] sm:$0xf]  ;;  %v908_v63 = vld [vmem:[%s1383_s5 + $0x64] sm:$0xf0]  ;;  %v840_v3 = vor.u32 %v922_v59, %v839_v58 }
  0x1e   :  { %285 = vmatpush.bf16.msra.mxu2 %v616_v19  ;;  %v784_v0 = vor.u32 %v908_v63, %v783_v62  ;;  %v907_v1 = vld [vmem:[%s1383_s5 + $0x64] sm:$0xf]  ;;  %v785_v2 = vld [vmem:[%s1383_s5 + $0x68] sm:$0xf0]  ;;  %v831_v5 = vld [vmem:[%s1383_s5 + $0xc0] sm:$0xf]  ;;  %v844_v7 = vor.u32 %v921_v60, %v841_v61 }
  0x1f   :  { %298 = vmatpush.bf16.msra.mxu3 %v680_v23  ;;  %v788_v4 = vor.u32 %v907_v1, %v785_v2  ;;  %v920_v6 = vld [vmem:[%s1383_s5 + $0xc4] sm:$0xf0]  ;;  %v775_v8 = vld [vmem:[%s1383_s5 + $0x50] sm:$0xf]  ;;  %v906_v9 = vld [vmem:[%s1383_s5 + $0x54] sm:$0xf0] }
  0x20   :  { %311 = vmatpush.bf16.msrb.mxu0 %v620_v24  ;;  %v905_v10 = vld [vmem:[%s1383_s5 + $0x54] sm:$0xf]  ;;  %v919_v11 = vld [vmem:[%s1383_s5 + $0xc4] sm:$0xf]  ;;  %v833_v12 = vld [vmem:[%s1383_s5 + $0xc8] sm:$0xf0]  ;;  %v776_v14 = vor.u32 %v906_v9, %v775_v8  ;;  %v832_v17 = vor.u32 %v920_v6, %v831_v5 }
  0x21   :  { %324 = vmatpush.bf16.msrb.mxu1 %v684_v27  ;;  %v777_v13 = vld [vmem:[%s1383_s5 + $0x58] sm:$0xf0]  ;;  %v767_v16 = vld [vmem:[%s1383_s5 + $0x40] sm:$0xf]  ;;  %v904_v18 = vld [vmem:[%s1383_s5 + $0x44] sm:$0xf0]  ;;  %v836_v21 = vor.u32 %v919_v11, %v833_v12 }
  0x22   :  { %286 = vmatpush.bf16.msra.mxu2 %v608_v31  ;;  %v780_v15 = vor.u32 %v905_v10, %v777_v13  ;;  %v903_v19 = vld [vmem:[%s1383_s5 + $0x44] sm:$0xf]  ;;  %v769_v20 = vld [vmem:[%s1383_s5 + $0x48] sm:$0xf0]  ;;  %v823_v22 = vld [vmem:[%s1383_s5 + $0xb0] sm:$0xf]  ;;  %v768_v26 = vor.u32 %v904_v18, %v767_v16 }
  0x23   :  { %299 = vmatpush.bf16.msra.mxu3 %v672_v35  ;;  %v918_v23 = vld [vmem:[%s1383_s5 + $0xb4] sm:$0xf0]  ;;  %v917_v24 = vld [vmem:[%s1383_s5 + $0xb4] sm:$0xf]  ;;  %v825_v25 = vld [vmem:[%s1383_s5 + $0xb8] sm:$0xf0]  ;;  %v772_v27 = vor.u32 %v903_v19, %v769_v20 }
  0x24   :  { %312 = vmatpush.bf16.msrb.mxu0 %v612_v36  ;;  %v824_v28 = vor.u32 %v918_v23, %v823_v22  ;;  %v828_v29 = vor.u32 %v917_v24, %v825_v25  ;;  %v815_v30 = vld [vmem:[%s1383_s5 + $0xa0] sm:$0xf]  ;;  %v916_v31 = vld [vmem:[%s1383_s5 + $0xa4] sm:$0xf0]  ;;  %v915_v33 = vld [vmem:[%s1383_s5 + $0xa4] sm:$0xf] }
  0x25   :  { %325 = vmatpush.bf16.msrb.mxu1 %v676_v39  ;;  %v31_v32 = vld [vmem:[%s1384_s2] sm:$0x3]  ;;  %v817_v34 = vld [vmem:[%s1383_s5 + $0xa8] sm:$0xf0]  ;;  %v816_v35 = vor.u32 %v916_v31, %v815_v30  ;;  %v759_v49 = vld [vmem:[%s1383_s5 + $0x30] sm:$0xf] }
  0x26   :  { %533 = vmatpush.bf16.msrb.mxu2 %v792_v56  ;;  %v33_v36 = vperm.slane %v31_v32, 0  ;;  %v820_v37 = vor.u32 %v915_v33, %v817_v34  ;;  %v34_v38 = vperm.slane %v31_v32, 1  ;;  %v902_v50 = vld [vmem:[%s1383_s5 + $0x34] sm:$0xf0]  ;;  %v761_v53 = vld [vmem:[%s1383_s5 + $0x38] sm:$0xf0] }
  0x27   :  { %546 = vmatpush.bf16.msrb.mxu3 %v856_v43  ;;  %v760_v52 = vor.u32 %v902_v50, %v759_v49  ;;  %v914_v56 = vld [vmem:[%s1383_s5 + $0x94] sm:$0xf0]  ;;  %v809_v59 = vld [vmem:[%s1383_s5 + $0x98] sm:$0xf0]  ;;  %v751_v61 = vld [vmem:[%s1383_s5 + $0x20] sm:$0xf] }
  0x28   :  { %559 = vmatpush.bf16.msra.mxu0 %v796_v57  ;;  %v913_v57 = vld [vmem:[%s1383_s5 + $0x94] sm:$0xf]  ;;  %v900_v62 = vld [vmem:[%s1383_s5 + $0x24] sm:$0xf0]  ;;  %v899_v63 = vld [vmem:[%s1383_s5 + $0x24] sm:$0xf] }
  0x29   :  { %572 = vmatpush.bf16.msra.mxu1 %v860_v47  ;;  %v812_v60 = vor.u32 %v913_v57, %v809_v59  ;;  %v753_v1 = vld [vmem:[%s1383_s5 + $0x28] sm:$0xf0]  ;;  %v911_v5 = vld [vmem:[%s1383_s5 + $0x84] sm:$0xf]  ;;  %v743_v9 = vld [vmem:[%s1383_s5 + $0x10] sm:$0xf] }
  0x2a   :  { %534 = vmatpush.bf16.msrb.mxu2 %v784_v0  ;;  %v752_v0 = vor.u32 %v900_v62, %v751_v61  ;;  %v756_v2 = vor.u32 %v899_v63, %v753_v1  ;;  %v898_v10 = vld [vmem:[%s1383_s5 + $0x14] sm:$0xf0]  ;;  %v897_v12 = vld [vmem:[%s1383_s5 + $0x14] sm:$0xf]  ;;  %v745_v13 = vld [vmem:[%s1383_s5 + $0x18] sm:$0xf0] }
  0x2b   :  { %547 = vmatpush.bf16.msrb.mxu3 %v848_v51  ;;  %v901_v51 = vld [vmem:[%s1383_s5 + $0x34] sm:$0xf]  ;;  %v744_v11 = vor.u32 %v898_v10, %v743_v9  ;;  %v896_v16 = vld [vmem:[%s1383_s5 + $0x4] sm:$0xf0]  ;;  %v737_v19 = vld [vmem:[%s1383_s5 + $0x8] sm:$0xf0] }
  0x2c   :  { %560 = vmatpush.bf16.msra.mxu0 %v788_v4  ;;  %v764_v54 = vor.u32 %v901_v51, %v761_v53  ;;  %v912_v4 = vld [vmem:[%s1383_s5 + $0x84] sm:$0xf0] }
  0x2d   :  { %573 = vmatpush.bf16.msra.mxu1 %v852_v55  ;;  %v807_v55 = vld [vmem:[%s1383_s5 + $0x90] sm:$0xf] }
  0x2e   :  { %535 = vmatpush.bf16.msrb.mxu2 %v776_v14  ;;  %v808_v58 = vor.u32 %v914_v56, %v807_v55  ;;  %v748_v14 = vor.u32 %v897_v12, %v745_v13 }
  0x2f   :  { %548 = vmatpush.bf16.msrb.mxu3 %v840_v3  ;;  %v799_v3 = vld [vmem:[%s1383_s5 + $0x80] sm:$0xf] }
  0x30   :  { %561 = vmatpush.bf16.msra.mxu0 %v780_v15  ;;  %v800_v6 = vor.u32 %v912_v4, %v799_v3  ;;  %v735_v15 = vld [vmem:[%s1383_s5] sm:$0xf] }
  0x31   :  { %574 = vmatpush.bf16.msra.mxu1 %v844_v7  ;;  %v801_v7 = vld [vmem:[%s1383_s5 + $0x88] sm:$0xf0]  ;;  %v736_v18 = vor.u32 %v896_v16, %v735_v15 }
  0x32   :  { %536 = vmatpush.bf16.msrb.mxu2 %v768_v26  ;;  %v804_v8 = vor.u32 %v911_v5, %v801_v7 }
  0x33   :  { %549 = vmatpush.bf16.msrb.mxu3 %v832_v17  ;;  %v895_v17 = vld [vmem:[%s1383_s5 + $0x4] sm:$0xf] }
  0x34   :  { %562 = vmatpush.bf16.msra.mxu0 %v772_v27  ;;  %v740_v20 = vor.u32 %v895_v17, %v737_v19 }
  0x35   :  { %575 = vmatpush.bf16.msra.mxu1 %v836_v21  ;;  %v113_v21 = vld [vmem:[%s1385_s4] sm:$0x3] }
  0x36   :  { %537 = vmatpush.bf16.msrb.mxu2 %v760_v52  ;;  %v116_v22 = vperm.slane %v113_v21, 1  ;;  %v115_v27 = vperm.slane %v113_v21, 0 }
  0x37   :  { %550 = vmatpush.bf16.msrb.mxu3 %v824_v28 }
  0x38   :  { %563 = vmatpush.bf16.msra.mxu0 %v764_v54 }
  0x39   :  { %576 = vmatpush.bf16.msra.mxu1 %v828_v29 }
  0x3a   :  { %538 = vmatpush.bf16.msrb.mxu2 %v752_v0 }
  0x3b   :  { %551 = vmatpush.bf16.msrb.mxu3 %v816_v35 }
  0x3c   :  { %564 = vmatpush.bf16.msra.mxu0 %v756_v2 }
  0x3d   :  { %577 = vmatpush.bf16.msra.mxu1 %v820_v37 }
  0x3e   :  { %539 = vmatpush.bf16.msrb.mxu2 %v744_v11 }
  0x3f   :  { %552 = vmatpush.bf16.msrb.mxu3 %v808_v58 }
  0x40   :  { %565 = vmatpush.bf16.msra.mxu0 %v748_v14 }
  0x41   :  { %578 = vmatpush.bf16.msra.mxu1 %v812_v60 }
  0x42   :  { %540 = vmatpush.bf16.msrb.mxu2 %v736_v18 }
  0x43   :  { %553 = vmatpush.bf16.msrb.mxu3 %v800_v6 }
  0x44   :  { %566 = vmatpush.bf16.msra.mxu0 %v740_v20 }
  0x45   :  { %579 = vmatpush.bf16.msra.mxu1 %v804_v8 }
  0x84   :  { %v60_v39 = vpop.f32.mrf.mxu0 }
  0x85   :  { %v61_v40 = vadd.f32 %v60_v39, %v33_v36  ;;  %v73_v41 = vpop.f32.mrf.mxu1 }
  0x86   :  { %v74_v42 = vadd.f32 %v73_v41, %v34_v38  ;;  %v367_v41 = vld [vmem:[%s1386_s6] sm:$0x3] }
  0x87   :  { %v77_v43 = vmax.f32 %v61_v40, 0.0 }
  0x88   :  { %v78_v44 = vmax.f32 %v74_v42, 0.0  ;;  %v370_v42 = vperm.slane %v367_v41, 1 }
  0x89   :  { %v79_v45 = vpack.c.bf16 %v77_v43, %v77_v43 }
  0x8a   :  { %v80_v46 = vpack.c.bf16 %v78_v44, %v78_v44 }
  0x8b   :  { %287 = vmatmul.bf16.vlgmr.msra.gmra.mxu2 %v79_v45  ;;  %313 = vmatmul.bf16.vlgmr.msrb.gmra.mxu0 %v79_v45 }
  0x8c   :  { %300 = vmatmul.bf16.vlgmr.msra.gmra.mxu3 %v80_v46  ;;  %326 = vmatmul.bf16.vlgmr.msrb.gmra.mxu1 %v80_v46  ;;  %v62_v47 = vpop.f32.mrf.mxu0 }
  0x8d   :  { %v75_v48 = vpop.f32.mrf.mxu1 }
  0x8e   :  { %v369_v48 = vperm.slane %v367_v41, 0 }
 0x108   :  { %v314_v23 = vpop.f32.mrf.mxu0 }
 0x109   :  { %v315_v24 = vadd.f32 %v314_v23, %v116_v22  ;;  %v327_v25 = vpop.f32.mrf.mxu1 }
 0x10b   :  { %v328_v26 = vadd.f32 %v327_v25, %v315_v24 }
 0x10d   :  { %v332_v28 = vmax.f32 %v328_v26, 0.0 }
 0x10e   :  { %v288_v29 = vpop.f32.mrf.mxu2 }
 0x10f   :  { %v334_v30 = vpack.c.bf16 %v332_v28, %v332_v28  ;;  %v289_v31 = vadd.f32 %v288_v29, %v115_v27  ;;  %v301_v32 = vpop.f32.mrf.mxu3 }
 0x110   :  { %v316_v33 = vpop.f32.mrf.mxu0 }
 0x111   :  { %v302_v34 = vadd.f32 %v301_v32, %v289_v31  ;;  %v329_v35 = vpop.f32.mrf.mxu1  ;;  %554 = vmatmul.bf16.vlgmr.msrb.gmra.mxu3 %v334_v30  ;;  %580 = vmatmul.bf16.vlgmr.msra.gmra.mxu1 %v334_v30 }
 0x113   :  { %v331_v36 = vmax.f32 %v302_v34, 0.0 }
 0x115   :  { %v333_v37 = vpack.c.bf16 %v331_v36, %v331_v36 }
 0x116   :  { %v290_v38 = vpop.f32.mrf.mxu2 }
 0x117   :  { %v303_v39 = vpop.f32.mrf.mxu3  ;;  %541 = vmatmul.bf16.vlgmr.msrb.gmra.mxu2 %v333_v37  ;;  %567 = vmatmul.bf16.vlgmr.msra.gmra.mxu0 %v333_v37 }
 0x18e   :  { %v581_v40 = vpop.f32.mrf.mxu1 }
 0x194   :  { %v555_v43 = vpop.f32.mrf.mxu3  ;;  %v568_v44 = vpop.f32.mrf.mxu0 }
 0x195   :  { %v569_v45 = vadd.f32 %v568_v44, %v370_v42 }
 0x196   :  { %v583_v46 = vpop.f32.mrf.mxu1 }
 0x197   :  { %v582_v47 = vadd.f32 %v581_v40, %v569_v45 }
 0x19a   :  { %v542_v49 = vpop.f32.mrf.mxu2 }
 0x19b   :  { %v543_v50 = vadd.f32 %v542_v49, %v369_v48 }
 0x19c   :  { %v557_v51 = vpop.f32.mrf.mxu3  ;;  %v570_v52 = vpop.f32.mrf.mxu0 }
 0x19d   :  { %v556_v53 = vadd.f32 %v555_v43, %v543_v50 }
 0x19f   :  { %585 = vadd.xlane.f32.xlu0 %v556_v53  ;;  %v588_v54 = vadd.f32 %v582_v47, %v556_v53 }
 0x1a2   :  { %v544_v55 = vpop.f32.mrf.mxu2 }
 0x212   :  { %v586_v56 = vpop.xlane.xlu0 %585 }
 0x213   :  { %v587_v57 = vmul.f32 0.25, %v586_v56 }
 0x215   :  { %v589_v58 = vsub.f32 %v588_v54, %v587_v57 }
 0x217   :  { %590 = vst [vmem:[%s1387_s7] sm:$0xff] %v589_v58 }

</bundles_post_ra>
